<compile_context>
chip_gen: v6e
topology: v6e:2x2x1
jax: 0.10.0
libtpu: 0.0.40
codegen_flags: <defaults>
</compile_context>

<pallas_src>
import jax
import jax.numpy as jnp
from jax.experimental import pallas as pl
from jax.experimental.pallas import tpu as pltpu


def rnn_seq_kernel(cat_ref, x_ref, h0_ref,
                   w1c_ref, w1i_ref, w1h_ref, b1_ref, w2_ref, b2_ref,
                   out_ref, hid_ref,
                   catc_ref):
    """One grid step = one RNN timestep for one batch block."""
    t = pl.program_id(1)
    H = hid_ref.shape[-1]

    @pl.when(t == 0)
    def _init():
        # Per-sequence-block setup: the category term (and the fused bias) is
        # constant over time, so compute it once and cache it in VMEM scratch.
        catc_ref[...] = (
            jnp.dot(cat_ref[...], w1c_ref[...],
                    preferred_element_type=jnp.float32)
            + b1_ref[...])
        # Recurrent state is carried in the VMEM-resident hidden output block.
        hid_ref[...] = h0_ref[...]

    h = hid_ref[...]                      # (bb, H) previous hidden state
    x_t = x_ref[0]                        # (bb, I) current timestep input

    # Fused i2h / i2o:  [hidden' | out1] = xc @ [W_ih | W_io] + [b_ih | b_io]
    # with xc @ W1 expanded as cat@W1_c + x@W1_i + h@W1_h (no concat needed).
    ho = (catc_ref[...]
          + jnp.dot(x_t, w1i_ref[...], preferred_element_type=jnp.float32)
          + jnp.dot(h, w1h_ref[...], preferred_element_type=jnp.float32))

    h_new = ho[:, :H]                     # hidden' = first H lanes of fused tile

    # o2o(concat([hidden', out1])) == ho @ W_o2o + b_o2o   (single matmul)
    logits = (jnp.dot(ho, w2_ref[...], preferred_element_type=jnp.float32)
              + b2_ref[...])

    # dropout (eval mode) == identity
    # log_softmax along the class axis, kept in f32.
    m = jnp.max(logits, axis=-1, keepdims=True)
    z = logits - m
    lse = jnp.log(jnp.sum(jnp.exp(z), axis=-1, keepdims=True))

    out_ref[0] = z - lse
    hid_ref[...] = h_new


def rnn_forward_seq(category, inputs, h0, fused_params, *, batch_block=8):
    """Run T RNN steps in a single pallas_call.

    category: (B, C)    constant per sequence
    inputs:   (T, B, I) per-timestep inputs
    h0:       (B, H)    initial hidden
    Returns   (log_probs (T, B, O), final hidden (B, H)).
    """
    w1c, w1i, w1h, b1, w2, b2 = fused_params
    T, B, I = inputs.shape
    C = category.shape[1]
    H = w1h.shape[0]
    O = w2.shape[1]
    HO = H + O

    bb = B if B < batch_block else batch_block
    assert B % bb == 0, "batch must be divisible by the batch block"
    nb = B // bb
    grid = (nb, T)

    const = lambda b, t: (0, 0)
    per_batch = lambda b, t: (b, 0)
    per_step = lambda b, t: (t, b, 0)

    in_specs = [
        pl.BlockSpec((bb, C), per_batch),        # category
        pl.BlockSpec((1, bb, I), per_step),      # inputs (one timestep)
        pl.BlockSpec((bb, H), per_batch),        # h0
        pl.BlockSpec((C, HO), const),            # W1_c   (VMEM-resident)
        pl.BlockSpec((I, HO), const),            # W1_i   (VMEM-resident)
        pl.BlockSpec((H, HO), const),            # W1_h   (VMEM-resident)
        pl.BlockSpec((1, HO), const),            # b1
        pl.BlockSpec((HO, O), const),            # W_o2o  (VMEM-resident)
        pl.BlockSpec((1, O), const),             # b_o2o
    ]
    out_specs = [
        pl.BlockSpec((1, bb, O), per_step),      # per-step log-probs
        pl.BlockSpec((bb, H), per_batch),        # final hidden (resident over t)
    ]

    flops = 2 * T * B * ((C + I + H) * HO + HO * O)
    bytes_accessed = sum(int(a.size) * 4 for a in
                         (category, inputs, h0, w1c, w1i, w1h, b1, w2, b2))
    bytes_accessed += (T * B * O + B * H) * 4
    cost = pl.CostEstimate(flops=flops,
                           transcendentals=T * B * (O + 1),
                           bytes_accessed=bytes_accessed)

    return pl.pallas_call(
        rnn_seq_kernel,
        out_shape=(jax.ShapeDtypeStruct((T, B, O), jnp.float32),
                   jax.ShapeDtypeStruct((B, H), jnp.float32)),
        grid_spec=pltpu.PrefetchScalarGridSpec(
            num_scalar_prefetch=0,
            grid=grid,
            in_specs=in_specs,
            out_specs=out_specs,
            scratch_shapes=[pltpu.VMEM((bb, HO), jnp.float32)],
        ),
        compiler_params=pltpu.CompilerParams(
            dimension_semantics=("parallel", "arbitrary"),
            vmem_limit_bytes=32 * 1024 * 1024,
        ),
        cost_estimate=cost,
    )(category, inputs, h0, w1c, w1i, w1h, b1, w2, b2)


def init_raw_params(key, n_categories, input_size, hidden_size, output_size):
    """nn.Linear-style U(-1/sqrt(fan_in), 1/sqrt(fan_in)); weights stored as
    (in_features, out_features)."""
    d_in1 = n_categories + input_size + hidden_size
    d_in2 = hidden_size + output_size
    ks = jax.random.split(key, 6)

    def u(k, shape, fan_in):
        bound = 1.0 / jnp.sqrt(jnp.float32(fan_in))
        return jax.random.uniform(k, shape, jnp.float32, -bound, bound)

    w_ih = u(ks[0], (d_in1, hidden_size), d_in1)
    b_ih = u(ks[1], (1, hidden_size), d_in1)
    w_io = u(ks[2], (d_in1, output_size), d_in1)
    b_io = u(ks[3], (1, output_size), d_in1)
    w_o2o = u(ks[4], (d_in2, output_size), d_in2)
    b_o2o = u(ks[5], (1, output_size), d_in2)
    return (w_ih, b_ih, w_io, b_io, w_o2o, b_o2o)


def fuse_params(raw, n_categories, input_size):
    """Fuse i2h/i2o column-wise and split the fused weight row-wise so the
    kernel never needs to concatenate activations."""
    w_ih, b_ih, w_io, b_io, w_o2o, b_o2o = raw
    w1 = jnp.concatenate([w_ih, w_io], axis=1)       # (d_in1, H+O)
    b1 = jnp.concatenate([b_ih, b_io], axis=1)       # (1, H+O)
    C, I = n_categories, input_size
    w1_c = w1[:C]
    w1_i = w1[C:C + I]
    w1_h = w1[C + I:]
    return (w1_c, w1_i, w1_h, b1, w_o2o, b_o2o)


def rnn_forward_seq_ref(category, inputs, h0, raw):
    """Pure-JAX reference: loops the original (un-fused) per-step forward."""
    w_ih, b_ih, w_io, b_io, w_o2o, b_o2o = raw

    def step(h, x):
        xc = jnp.concatenate([category, x, h], axis=1)
        h_new = xc @ w_ih + b_ih
        o = xc @ w_io + b_io
        oc = jnp.concatenate([h_new, o], axis=1)
        o = oc @ w_o2o + b_o2o
        o = jax.nn.log_softmax(o, axis=1)
        return h_new, o

    h_final, outs = jax.lax.scan(step, h0, inputs)
    return outs, h_final


if __name__ == "__main__":
    # Small shapes consistent with the module's forward, with the character
    # loop moved inside the kernel and batch sized to fill f32 sublanes.
    B, T = 8, 8
    n_categories, input_size, hidden_size, output_size = 4, 8, 32, 16

    key = jax.random.PRNGKey(0)
    k_cat, k_inp, k_par = jax.random.split(key, 3)

    category = jax.random.normal(k_cat, (B, n_categories), jnp.float32)
    inputs = jax.random.normal(k_inp, (T, B, input_size), jnp.float32)
    h0 = jnp.zeros((B, hidden_size), jnp.float32)     # RNN.initHidden()

    raw = init_raw_params(k_par, n_categories, input_size, hidden_size,
                          output_size)
    fused = fuse_params(raw, n_categories, input_size)

    out, hid = rnn_forward_seq(category, inputs, h0, fused)
    out = jax.block_until_ready(out)
    hid = jax.block_until_ready(hid)

    out_ref, hid_ref = rnn_forward_seq_ref(category, inputs, h0, raw)
    assert jnp.allclose(out, out_ref, atol=1e-4, rtol=1e-4), \
        float(jnp.max(jnp.abs(out - out_ref)))
    assert jnp.allclose(hid, hid_ref, atol=1e-4, rtol=1e-4), \
        float(jnp.max(jnp.abs(hid - hid_ref)))

    print("KERNEL_OK")
</pallas_src>

<mosaic_0001>
module attributes {stable_mosaic.version = 11 : i64} {
  func.func @rnn_seq_kernel(%arg0: i32, %arg1: i32, %arg2: memref<8x4xf32, #tpu.memory_space<vmem>>, %arg3: memref<1x8x8xf32, #tpu.memory_space<vmem>>, %arg4: memref<8x32xf32, #tpu.memory_space<vmem>>, %arg5: memref<4x48xf32, #tpu.memory_space<vmem>>, %arg6: memref<8x48xf32, #tpu.memory_space<vmem>>, %arg7: memref<32x48xf32, #tpu.memory_space<vmem>>, %arg8: memref<1x48xf32, #tpu.memory_space<vmem>>, %arg9: memref<48x16xf32, #tpu.memory_space<vmem>>, %arg10: memref<1x16xf32, #tpu.memory_space<vmem>>, %arg11: memref<1x8x16xf32, #tpu.memory_space<vmem>>, %arg12: memref<8x32xf32, #tpu.memory_space<vmem>>, %arg13: memref<8x48xf32, #tpu.memory_space<vmem>>) attributes {dimension_semantics = [#tpu.dimension_semantics<parallel>, #tpu.dimension_semantics<arbitrary>], iteration_bounds = array<i64: 1, 8>, scalar_prefetch = 0 : i64, scratch_operands = 1 : i64, tpu.core_type = #tpu.core_type<tc>, window_params = [{transform_indices = @transform_0, window_bounds = array<i64: 8, 4>}, {transform_indices = @transform_1, window_bounds = array<i64: 1, 8, 8>}, {transform_indices = @transform_2, window_bounds = array<i64: 8, 32>}, {pipeline_mode = #tpu.pipeline_mode<synchronous>, transform_indices = @transform_3, window_bounds = array<i64: 4, 48>}, {pipeline_mode = #tpu.pipeline_mode<synchronous>, transform_indices = @transform_4, window_bounds = array<i64: 8, 48>}, {pipeline_mode = #tpu.pipeline_mode<synchronous>, transform_indices = @transform_5, window_bounds = array<i64: 32, 48>}, {pipeline_mode = #tpu.pipeline_mode<synchronous>, transform_indices = @transform_6, window_bounds = array<i64: 1, 48>}, {pipeline_mode = #tpu.pipeline_mode<synchronous>, transform_indices = @transform_7, window_bounds = array<i64: 48, 16>}, {pipeline_mode = #tpu.pipeline_mode<synchronous>, transform_indices = @transform_8, window_bounds = array<i64: 1, 16>}, {transform_indices = @transform_9, window_bounds = array<i64: 1, 8, 16>}, {transform_indices = @transform_10, window_bounds = array<i64: 8, 32>}]} {
    %c0_i32 = arith.constant 0 : i32
    %0 = arith.cmpi eq, %arg1, %c0_i32 : i32
    %1 = arith.extui %0 : i1 to i32
    %c0_i32_0 = arith.constant 0 : i32
    %2 = arith.cmpi ne, %1, %c0_i32_0 : i32
    scf.if %2 {
      %c0_24 = arith.constant 0 : index
      %c0_25 = arith.constant 0 : index
      %33 = vector.load %arg2[%c0_24, %c0_25] : memref<8x4xf32, #tpu.memory_space<vmem>>, vector<8x4xf32>
      %c0_26 = arith.constant 0 : index
      %c0_27 = arith.constant 0 : index
      %34 = vector.load %arg5[%c0_26, %c0_27] : memref<4x48xf32, #tpu.memory_space<vmem>>, vector<4x48xf32>
      %cst_28 = arith.constant dense<0.000000e+00> : vector<8x48xf32>
      %35 = tpu.matmul %33, %34, %cst_28 {dimension_numbers = #tpu.dot_dimension_numbers<[1], [0], [0], [1], [0, 0, 1, 1], [], []>} : vector<8x4xf32>, vector<4x48xf32>, vector<8x48xf32> -> vector<8x48xf32>
      %c0_29 = arith.constant 0 : index
      %c0_30 = arith.constant 0 : index
      %36 = vector.load %arg8[%c0_29, %c0_30] : memref<1x48xf32, #tpu.memory_space<vmem>>, vector<1x48xf32>
      %37 = vector.broadcast %36 : vector<1x48xf32> to vector<8x48xf32>
      %38 = arith.addf %35, %37 : vector<8x48xf32>
      %c0_31 = arith.constant 0 : index
      %c0_32 = arith.constant 0 : index
      %39 = vector.load %arg13[%c0_31, %c0_32] : memref<8x48xf32, #tpu.memory_space<vmem>>, vector<8x48xf32>
      tpu.vector_store %arg13[%c0_31, %c0_32], %38 {strides = array<i32>} : memref<8x48xf32, #tpu.memory_space<vmem>>, vector<8x48xf32>,
      %c0_33 = arith.constant 0 : index
      %c0_34 = arith.constant 0 : index
      %40 = vector.load %arg4[%c0_33, %c0_34] : memref<8x32xf32, #tpu.memory_space<vmem>>, vector<8x32xf32>
      %c0_35 = arith.constant 0 : index
      %c0_36 = arith.constant 0 : index
      %41 = vector.load %arg12[%c0_35, %c0_36] : memref<8x32xf32, #tpu.memory_space<vmem>>, vector<8x32xf32>
      tpu.vector_store %arg12[%c0_35, %c0_36], %40 {strides = array<i32>} : memref<8x32xf32, #tpu.memory_space<vmem>>, vector<8x32xf32>,
    } else {
    }
    %c0 = arith.constant 0 : index
    %c0_1 = arith.constant 0 : index
    %3 = vector.load %arg12[%c0, %c0_1] : memref<8x32xf32, #tpu.memory_space<vmem>>, vector<8x32xf32>
    %c0_2 = arith.constant 0 : index
    %c0_3 = arith.constant 0 : index
    %c0_4 = arith.constant 0 : index
    %4 = vector.load %arg3[%c0_2, %c0_3, %c0_4] : memref<1x8x8xf32, #tpu.memory_space<vmem>>, vector<1x8x8xf32>
    %5 = vector.shape_cast %4 : vector<1x8x8xf32> to vector<8x8xf32>
    %c0_5 = arith.constant 0 : index
    %c0_6 = arith.constant 0 : index
    %6 = vector.load %arg13[%c0_5, %c0_6] : memref<8x48xf32, #tpu.memory_space<vmem>>, vector<8x48xf32>
    %c0_7 = arith.constant 0 : index
    %c0_8 = arith.constant 0 : index
    %7 = vector.load %arg6[%c0_7, %c0_8] : memref<8x48xf32, #tpu.memory_space<vmem>>, vector<8x48xf32>
    %cst = arith.constant dense<0.000000e+00> : vector<8x48xf32>
    %8 = tpu.matmul %5, %7, %cst {dimension_numbers = #tpu.dot_dimension_numbers<[1], [0], [0], [1], [0, 0, 1, 1], [], []>} : vector<8x8xf32>, vector<8x48xf32>, vector<8x48xf32> -> vector<8x48xf32>
    %9 = arith.addf %6, %8 : vector<8x48xf32>
    %c0_9 = arith.constant 0 : index
    %c0_10 = arith.constant 0 : index
    %10 = vector.load %arg7[%c0_9, %c0_10] : memref<32x48xf32, #tpu.memory_space<vmem>>, vector<32x48xf32>
    %cst_11 = arith.constant dense<0.000000e+00> : vector<8x48xf32>
    %11 = tpu.matmul %3, %10, %cst_11 {dimension_numbers = #tpu.dot_dimension_numbers<[1], [0], [0], [1], [0, 0, 1, 1], [], []>} : vector<8x32xf32>, vector<32x48xf32>, vector<8x48xf32> -> vector<8x48xf32>
    %12 = arith.addf %9, %11 : vector<8x48xf32>
    %13 = vector.extract_strided_slice %12 {offsets = [0, 0], sizes = [8, 32], strides = [1, 1]} : vector<8x48xf32> to vector<8x32xf32>
    %c0_12 = arith.constant 0 : index
    %c0_13 = arith.constant 0 : index
    %14 = vector.load %arg9[%c0_12, %c0_13] : memref<48x16xf32, #tpu.memory_space<vmem>>, vector<48x16xf32>
    %cst_14 = arith.constant dense<0.000000e+00> : vector<8x16xf32>
    %15 = tpu.matmul %12, %14, %cst_14 {dimension_numbers = #tpu.dot_dimension_numbers<[1], [0], [0], [1], [0, 0, 1, 1], [], []>} : vector<8x48xf32>, vector<48x16xf32>, vector<8x16xf32> -> vector<8x16xf32>
    %c0_15 = arith.constant 0 : index
    %c0_16 = arith.constant 0 : index
    %16 = vector.load %arg10[%c0_15, %c0_16] : memref<1x16xf32, #tpu.memory_space<vmem>>, vector<1x16xf32>
    %17 = vector.broadcast %16 : vector<1x16xf32> to vector<8x16xf32>
    %18 = arith.addf %15, %17 : vector<8x16xf32>
    %cst_17 = arith.constant dense<0xFF800000> : vector<8xf32>
    %19 = vector.multi_reduction <maximumf>, %18, %cst_17 [1] : vector<8x16xf32> to vector<8xf32>
    %20 = vector.shape_cast %19 : vector<8xf32> to vector<8x1xf32>
    %21 = vector.broadcast %20 : vector<8x1xf32> to vector<8x16xf32>
    %22 = arith.subf %18, %21 : vector<8x16xf32>
    %23 = math.exp %22 : vector<8x16xf32>
    %cst_18 = arith.constant dense<0.000000e+00> : vector<8xf32>
    %24 = vector.multi_reduction <add>, %23, %cst_18 [1] : vector<8x16xf32> to vector<8xf32>
    %25 = vector.shape_cast %24 : vector<8xf32> to vector<8x1xf32>
    %26 = math.log %25 : vector<8x1xf32>
    %27 = vector.broadcast %26 : vector<8x1xf32> to vector<8x16xf32>
    %28 = arith.subf %22, %27 : vector<8x16xf32>
    %c0_19 = arith.constant 0 : index
    %c0_20 = arith.constant 0 : index
    %c0_21 = arith.constant 0 : index
    %29 = vector.load %arg11[%c0_19, %c0_20, %c0_21] : memref<1x8x16xf32, #tpu.memory_space<vmem>>, vector<1x8x16xf32>
    %30 = vector.shape_cast %29 : vector<1x8x16xf32> to vector<8x16xf32>
    %31 = vector.shape_cast %28 : vector<8x16xf32> to vector<1x8x16xf32>
    tpu.vector_store %arg11[%c0_19, %c0_20, %c0_21], %31 {strides = array<i32>} : memref<1x8x16xf32, #tpu.memory_space<vmem>>, vector<1x8x16xf32>,
    %c0_22 = arith.constant 0 : index
    %c0_23 = arith.constant 0 : index
    %32 = vector.load %arg12[%c0_22, %c0_23] : memref<8x32xf32, #tpu.memory_space<vmem>>, vector<8x32xf32>
    tpu.vector_store %arg12[%c0_22, %c0_23], %13 {strides = array<i32>} : memref<8x32xf32, #tpu.memory_space<vmem>>, vector<8x32xf32>,
    return
  }
  func.func @transform_0(%arg0: i32, %arg1: i32) -> (i32, i32) {
    %c0_i32 = arith.constant 0 : i32
    %c0_i32_0 = arith.constant 0 : i32
    return %arg0, %c0_i32 : i32, i32
  }
  func.func @transform_1(%arg0: i32, %arg1: i32) -> (i32, i32, i32) {
    %c0_i32 = arith.constant 0 : i32
    %c0_i32_0 = arith.constant 0 : i32
    return %arg1, %arg0, %c0_i32 : i32, i32, i32
  }
  func.func @transform_2(%arg0: i32, %arg1: i32) -> (i32, i32) {
    %c0_i32 = arith.constant 0 : i32
    %c0_i32_0 = arith.constant 0 : i32
    return %arg0, %c0_i32 : i32, i32
  }
  func.func @transform_3(%arg0: i32, %arg1: i32) -> (i32, i32) {
    %c0_i32 = arith.constant 0 : i32
    %c0_i32_0 = arith.constant 0 : i32
    %c0_i32_1 = arith.constant 0 : i32
    return %c0_i32, %c0_i32_0 : i32, i32
  }
  func.func @transform_4(%arg0: i32, %arg1: i32) -> (i32, i32) {
    %c0_i32 = arith.constant 0 : i32
    %c0_i32_0 = arith.constant 0 : i32
    %c0_i32_1 = arith.constant 0 : i32
    return %c0_i32, %c0_i32_0 : i32, i32
  }
  func.func @transform_5(%arg0: i32, %arg1: i32) -> (i32, i32) {
    %c0_i32 = arith.constant 0 : i32
    %c0_i32_0 = arith.constant 0 : i32
    %c0_i32_1 = arith.constant 0 : i32
    return %c0_i32, %c0_i32_0 : i32, i32
  }
  func.func @transform_6(%arg0: i32, %arg1: i32) -> (i32, i32) {
    %c0_i32 = arith.constant 0 : i32
    %c0_i32_0 = arith.constant 0 : i32
    %c0_i32_1 = arith.constant 0 : i32
    return %c0_i32, %c0_i32_0 : i32, i32
  }
  func.func @transform_7(%arg0: i32, %arg1: i32) -> (i32, i32) {
    %c0_i32 = arith.constant 0 : i32
    %c0_i32_0 = arith.constant 0 : i32
    %c0_i32_1 = arith.constant 0 : i32
    return %c0_i32, %c0_i32_0 : i32, i32
  }
  func.func @transform_8(%arg0: i32, %arg1: i32) -> (i32, i32) {
    %c0_i32 = arith.constant 0 : i32
    %c0_i32_0 = arith.constant 0 : i32
    %c0_i32_1 = arith.constant 0 : i32
    return %c0_i32, %c0_i32_0 : i32, i32
  }
  func.func @transform_9(%arg0: i32, %arg1: i32) -> (i32, i32, i32) {
    %c0_i32 = arith.constant 0 : i32
    %c0_i32_0 = arith.constant 0 : i32
    return %arg1, %arg0, %c0_i32 : i32, i32, i32
  }
  func.func @transform_10(%arg0: i32, %arg1: i32) -> (i32, i32) {
    %c0_i32 = arith.constant 0 : i32
    %c0_i32_0 = arith.constant 0 : i32
    return %arg0, %c0_i32 : i32, i32
  }
}

</mosaic_0001>

<bundles_post_ra>
// kernel: tpu_custom_call.1
= control target key start
LH: loop header
LB: loop body
LE: loop exit
PB: predicated region body
PF: predicated region fallthrough
CT: control target
= control target key end

     0   :  { %s1719_s0 = inlined_call_operand.vmem [shape: f32[8,4], index: 0, kind: input, shape index: {}]   ;;  %s1720_s1 = inlined_call_operand.vmem [shape: f32[8,8,8], index: 1, kind: input, shape index: {}]   ;;  %s1721_s2 = inlined_call_operand.vmem [shape: f32[8,32], index: 2, kind: input, shape index: {}]   ;;  %s1722_s3 = inlined_call_operand.hbm [shape: f32[4,48], index: 3, kind: input, shape index: {}]   ;;  %s1723_s4 = inlined_call_operand.hbm [shape: f32[8,48], index: 4, kind: input, shape index: {}]   ;;  %s1724_s5 = inlined_call_operand.hbm [shape: f32[32,48], index: 5, kind: input, shape index: {}]   ;;  %s1725_s6 = inlined_call_operand.hbm [shape: f32[1,48], index: 6, kind: input, shape index: {}]   ;;  %s1726_s7 = inlined_call_operand.vmem [shape: f32[48,16], index: 7, kind: input, shape index: {}]   ;;  %s1727_s8 = inlined_call_operand.vmem [shape: f32[1,16], index: 8, kind: input, shape index: {}]   ;;  %s1728_s9 = inlined_call_operand.hbm [shape: f32[8,8,16], index: 9, kind: output, shape index: {0}]   ;;  %s1729_s10 = inlined_call_operand.hbm [shape: f32[8,32], index: 10, kind: output, shape index: {1}]  }
   0x1   :  { %1738 = sst [smem:[#allocation21_spill]] %s1722_s3 }
   0x2   :  { %1739 = sst [smem:[#allocation22_spill]] %s1723_s4 }
   0x3   :  { %16 = vsyncpa [#allocation4], 0 }
   0x4   :  { %17 = vsyncpa [#allocation7], 0 }
   0x5   :  { %18 = vsyncpa [#allocation10], 0 }
   0x6   :  { %19 = vsyncpa [#allocation5], 0 }
   0x7   :  { %21 = vsyncpa [#allocation5 + $0x1], 0 }
   0x8   :  { %22 = vsyncpa [#allocation13], 0  ;;  %s1495_s13 = smov 0   ;;  %s1497_s14 = smov 0  }
   0x9   :  { %s1499_s15 = smov 0   ;;  %s1501_s16 = smov 0  }
   0xa   :  { %s1503_s17 = smov 0   ;;  %s1505_s18 = smov 0  }
   0xb LB: > { %1740 = sst [smem:[#allocation19_spill]] %s1422_s17  ;;  %s1010_s19 = sadd.s32 4294967295, %s1426_s18   ;;  %s1426_s18 = sphi %s1505_s18, %s28_s18   ;;  %s1422_s17 = sphi %s1503_s17, %s1756_s17   ;;  %s1418_s16 = sphi %s1501_s16, %s1755_s16   ;;  %s1414_s15 = sphi %s1499_s15, %s1759_s15   ;;  %s1410_s14 = sphi %s1497_s14, %s1758_s14   ;;  %s1406_s13 = sphi %s1495_s13, %s1757_s13  }
   0xc   : > { %s1011_s20 = sadd.s32 4294967294, %s1426_s18   ;;  %s37_s21 = sadd.s32 1, %s1422_s17 }
   0xd   : > { %s255_s22 = sadd.s32 1, %s1414_s15  ;;  %p38_p0 = scmp.ge.s32.totalorder %s37_s21, 8 }
   0xe   : > { %p265_p1 = scmp.ne.s32.totalorder %s1414_s15, %s1410_s14  ;;  %p1531_p2 = scmp.eq.s32.totalorder %s1010_s19, 7 }
   0xf   : > { %p271_p3 = scmp.ne.s32.totalorder %s1410_s14, %s1406_s13  ;;  %s1761_s21 = smov (%p38_p0, %s37_s21), 0 }
  0x10   : > { %s1741_s23 = scalar_select %p1531_p2, 1, 0 }
  0x11   : > { %1742 = sst [smem:[#allocation20_spill]] %s1761_s21  ;;  %p1541_p4 = por %p1531_p2, %p265_p1 }
  0x12   : > { %p272_p5 = scmp.eq.s32.totalorder %s1011_s20, 7  ;;  %s250_s25 = ssub.s32 %s1422_s17, %s1761_s21 }
  0x13   : > { %s1743_s24 = scalar_select %p1541_p4, 1, 0 }
  0x14   : > { %p1012_p6 = scmp.ge.s32.totalorder %s1426_s18, 1  ;;  %p253_p7 = scmp.eq.s32.totalorder %s250_s25, 0 }
  0x15   : > { %p1548_p8 = por %p272_p5, %p271_p3  ;;  %p305_p9 = scmp.lt.s32.totalorder %s1426_s18, 9 }
  0x16   : > { %s1554_s27 = scalar_select %p253_p7, %s1414_s15, %s255_s22  }
  0x17   : > { %s1744_s26 = scalar_select %p1548_p8, 1, 0 }
  0x18   : > { %p1556_p10 = pnand %p1012_p6, %p305_p9  ;;  %p1560_p11 = scmp.eq.s32.totalorder %s1010_s19, 0 }
  0x19   : > { %s1428_s30 = smov [#allocation6]   ;;  %s1429_s20 = smov [#allocation3]  }
  0x1a   : > { %s1745_s28 = scalar_select %p1556_p10, 1, 0 }
  0x1b   : > { %s1746_s29 = scalar_select %p1560_p11, 1, 0 }
  0x1c   : > { %p1115_p12 = pneg %p1556_p10  ;;  %s343_s11 = sshll.u32 %s1428_s30, 4  ;;  %s344_s11 = int_to_ptr.vmem [resolvable:$true] %s343_s11 }
  0x1d   : > { %s332_s22 = sshll.u32 %s1429_s20, 4  ;;  %s1217_s19 = scalar_lea.vmem %s344_s11, 128  ;;  %s333_s22 = int_to_ptr.vmem [resolvable:$true] %s332_s22 }
  0x1e   : > { %p1568_p13 = pnand %p1560_p11, %p1115_p12  ;;  %p1218_p1 = scmp.ne.s32.totalorder %s344_s11, %s1217_s19 }
  0x1f   : > { %p1225_p6 = scmp.lt.s32.totalorder %s344_s11, %s344_s11  ;;  %p1226_p7 = scmp.lt.s32.totalorder %s1217_s19, %s1217_s19 }
  0x20   : > { %p1208_p0 = pneg %p1568_p13 }
  0x21   : > { %p1227_p9 = por %p1226_p7, %p1225_p6 }
  0x22   : > { %p1220_p3 = pnand %p1218_p1, %p1208_p0 }
  0x24   : > { %p1221_p5 = pneg %p1220_p3 }
  0x26   : > { %p1228_p12 = pnand %p1227_p9, %p1221_p5 }
  0x28   : > { %1231 = shalt.err (!%p1228_p12)
}
  0x29   : > { %s1748_s4 = sld [smem:[#allocation22_spill]]  ;;  %s1243_s20 = scalar_lea.vmem %s333_s22, 64 }
  0x2a   : > { %p1244_p8 = scmp.ne.s32.totalorder %s333_s22, %s1243_s20  ;;  %p1251_p1 = scmp.lt.s32.totalorder %s333_s22, %s333_s22 }
  0x2b   : > { %p1252_p3 = scmp.lt.s32.totalorder %s1243_s20, %s1243_s20 }
  0x2c   : > { %p1246_p4 = pnand %p1244_p8, %p1208_p0 }
  0x2d   : > { %p1253_p11 = por %p1252_p3, %p1251_p1 }
  0x2e   : > { %p1247_p2 = pneg %p1246_p4 }
  0x2f   : > { %1121 = dma.hbm_to_vmem [thread:$0]  (!%p1568_p13), %s1748_s4, 128, %s344_s11, [#allocation7]  }
  0x30   : > { %p1254_p10 = pnand %p1253_p11, %p1247_p2 }
  0x32   : > { %1257 = shalt.err (!%p1254_p10)
}
  0x33   : > { %s1749_s3 = sld [smem:[#allocation21_spill]]  ;;  %s1430_s25 = smov [#allocation8]  }
  0x34   : > { %s353_s11 = sshll.u32 %s1430_s25, 4  ;;  %s354_s11 = int_to_ptr.vmem [resolvable:$true] %s353_s11 }
  0x35   : > { %s1269_s30 = scalar_lea.vmem %s354_s11, 512  ;;  %p1277_p6 = scmp.lt.s32.totalorder %s354_s11, %s354_s11 }
  0x36   : > { %p1270_p5 = scmp.ne.s32.totalorder %s354_s11, %s1269_s30  ;;  %p1278_p7 = scmp.lt.s32.totalorder %s1269_s30, %s1269_s30 }
  0x38   : > { %p1272_p4 = pnand %p1270_p5, %p1208_p0  ;;  %p1279_p2 = por %p1278_p7, %p1277_p6 }
  0x39   : > { %1118 = dma.hbm_to_vmem [thread:$0]  (!%p1568_p13), %s1749_s3, 64, %s333_s22, [#allocation4]  }
  0x3a   : > { %p1273_p8 = pneg %p1272_p4 }
  0x3c   : > { %p1280_p10 = pnand %p1279_p2, %p1273_p8 }
  0x3e   : > { %1283 = shalt.err (!%p1280_p10)
}
  0x3f   : > { %s1431_s20 = smov 128   ;;  %s1432_s21 = smov 8  }
  0x40   : > { %1124 = dma.hbm_to_vmem [thread:$0]  (!%p1568_p13), %s1724_s5, 512, %s354_s11, [#allocation7], %s1431_s20, %s1431_s20, %s1432_s21  }
  0x41   : > { %s1433_s25 = smov [#allocation9]  }
  0x42   : > { %s367_s3 = sshll.u32 %s1433_s25, 4  ;;  %s368_s3 = int_to_ptr.vmem [resolvable:$true] %s367_s3 }
  0x43   : > { %s1295_s4 = scalar_lea.vmem %s368_s3, 16  ;;  %s1302_s30 = scalar_lea.vmem %s368_s3, 32 }
  0x44   : > { %p1296_p11 = scmp.ne.s32.totalorder %s368_s3, %s1295_s4  ;;  %p1303_p1 = scmp.lt.s32.totalorder %s368_s3, %s368_s3 }
  0x45   : > { %p1304_p3 = scmp.lt.s32.totalorder %s1302_s30, %s1295_s4 }
  0x46   : > { %p1298_p9 = pnand %p1296_p11, %p1208_p0 }
  0x47   : > { %p1305_p5 = por %p1304_p3, %p1303_p1 }
  0x48   : > { %p1299_p12 = pneg %p1298_p9 }
  0x4a   : > { %p1306_p4 = pnand %p1305_p5, %p1299_p12 }
  0x4c   : > { %1309 = shalt.err (!%p1306_p4)
}
  0x4d   : > { %1127 = dma.hbm_to_vmem [thread:$0]  (!%p1568_p13), %s1725_s6, 16, %s368_s3, [#allocation10]  }
  0x4e   : > { %p1750_p8 = scmp.ne.s32.totalorder %s1745_s28, 0 }
  0x4f   : > { %p1751_p6 = scmp.ne.s32.totalorder (!%p1750_p8), %s1746_s29, 0 }
  0x50   : > { %396 = sbr.rel (%p1750_p8) target bundleno = 1027 (0x403), region = 56 }
  0x55   : > { %1385 = dma.done.wait (%p1751_p6), [#allocation4], 64  }
  0x56   : > { %1387 = vsyncadd (%p1751_p6), [#allocation4], 4294967232 }
  0x57   : > { %1389 = dma.done.wait (%p1751_p6), [#allocation7], 640  }
  0x58   : > { %1391 = vsyncadd (%p1751_p6), [#allocation7], 4294966656 }
  0x59   : > { %1393 = dma.done.wait (%p1751_p6), [#allocation10], 16  }
  0x5a   : > { %1395 = vsyncadd (%p1751_p6), [#allocation10], 4294967280  ;;  %s451_s3 = sand.u32 1, %s1410_s14   ;;  %p460_p13 = scmp.lt.s32.totalorder %s1418_s16, 7 }
  0x5b   : > { %s1624_s4 = sshll.u32 %s451_s3, 3  ;;  %p1027_p0 = scmp.ne.s32.totalorder %s1418_s16, 0 }
  0x5c   : > { %s461_s17 = scalar_select %p460_p13, %s1418_s16, 7 }
  0x5d   : > { %s453_s21 = scalar_lea.vmem [#allocation11], %s1624_s4  ;;  %474 = sbr.rel (%p1027_p0) target bundleno = 297 (0x129), region = 76 }
  0x5e   : > { %s1026_s28 = sshll.u32 %s461_s17, 3 }
  0x5f   : > { %s466_s20 = scalar_lea.vmem %s1720_s1, %s1026_s28 }
  0x62   : > { %v476_v0 = vld [vmem:[#allocation3] sm:$0xf]  ;;  %vm488_vm0 = vcmask 1043456   ;;  %v475_v1 = vld [vmem:[%s1719_s0] sm:$0xff]  ;;  %v1434_v2 = vmov 0.0   ;;  %vm1435_vm1 = vmmov 0  }
  0x63   : > { %1057 = vmatprep.subr.mxu0 %v1434_v2  ;;  %1059 = vmatprep.mubr.msk.f32.mxu0 %vm1435_vm1, %v1434_v2  ;;  %vm484_vm2 = vcmask 31744   ;;  %v564_v3 = vld [vmem:[%s1721_s2] sm:$0xff]  ;;  %vm565_vm3 = vcmask 261120   ;;  %vm562_vm4 = vcmask 392192  }
  0x64   : > { %1058 = vmatpush3.msk.msra.mxu0 %vm488_vm0, %v476_v0  ;;  %566 = vst.msk [vmem:[#allocation12] sm:$0xff] %vm565_vm3, %v564_v3  ;;  %v1028_v4 = vld [vmem:[#allocation9] ss:$0 sm:$0xff] }
  0x65   : > { %1060 = vmatmul.mubr.msk.f32.vlgmr.msra.gmra.mxu0 %vm484_vm2, %v475_v1 }
 0x125   : > { %v558_v5 = vpop.f32.mrf.mxu0 }
 0x126   : > { %v559_v6 = vadd.f32 %v1028_v4, %v558_v5 }
 0x127   : > { %v1061_v7 = vpop.f32.mrf.mxu0 }
 0x128   : > { %563 = vst.msk [vmem:[#allocation2] sm:$0xff] %vm562_vm4, %v559_v6 }
 0x129 PF: > { %v570_v8 = vld [vmem:[#allocation6] sm:$0xff]  ;;  %vm571_vm5 = vcmask 64512   ;;  %v1436_v10 = vmov 0.0   ;;  %vm1437_vm6 = vmmov 0   ;;  %v648_v12 = vld [vmem:[#allocation8 + $0x10] sm:$0xff]  ;;  %v647_v13 = vld [vmem:[#allocation8 + $0x8] sm:$0xff] }
 0x12a   : > { %v568_v9 = vld [vmem:[%s466_s20] sm:$0xff]  ;;  %1062 = vmatprep.subr.mxu1 %v1436_v10  ;;  %1064 = vmatprep.mubr.msk.f32.mxu1 %vm1437_vm6, %v1436_v10  ;;  %v567_v15 = vld [vmem:[#allocation12] sm:$0xff]  ;;  %vm650_vm7 = vcmask 261120   ;;  %v730_v16 = vld [vmem:[%s1726_s7 + $0x28] sm:$0xff]  ;;  %vm738_vm8 = vcmask 392192   ;;  %vm812_vm9 = vcmask 130048  }
 0x12b   : > { %v649_v11 = vld [vmem:[#allocation8 + $0x18] sm:$0xff]  ;;  %1063 = vmatpush3.msra.mxu1 %v570_v8  ;;  %1078 = vmatprep.subr.mxu0 %v1436_v10  ;;  %v646_v14 = vld [vmem:[#allocation8] sm:$0xff]  ;;  %v727_v19 = vld [vmem:[%s1726_s7 + $0x10] sm:$0xff]  ;;  %s1438_s11 = smov [#allocation12]   ;;  %p1752_p2 = scmp.ne.s32.totalorder %s1741_s23, 0 }
 0x12c   : > { %1065 = vmatmul.mubr.msk.f32.vlgmr.msra.gmra.mxu1 %vm571_vm5, %v568_v9  ;;  %1067 = vmatprep.subr.mxu1 %v1436_v10  ;;  %v729_v17 = vld [vmem:[%s1726_s7 + $0x20] sm:$0xff]  ;;  %v728_v18 = vld [vmem:[%s1726_s7 + $0x18] sm:$0xff]  ;;  %v726_v20 = vld [vmem:[%s1726_s7 + $0x8] sm:$0xff]  ;;  %s855_s20 = sshll.u32 %s1438_s11, 4  ;;  %s856_s20 = int_to_ptr.vmem [resolvable:$true] %s855_s20 }
 0x12d   : > { %1068 = vmatpush3.msra.mxu1 %v649_v11  ;;  %1075 = vmatprep.mubr.msk.f32.mxu1 %vm1437_vm6, %v1436_v10  ;;  %v725_v21 = vld [vmem:[%s1726_s7] sm:$0xff]  ;;  %s1310_s29 = scalar_lea.vmem %s856_s20, 128  ;;  %p1317_p9 = scmp.lt.s32.totalorder %s856_s20, %s856_s20 }
 0x12e   : > { %1069 = vmatprep.subr.mxu1 %v1436_v10  ;;  %1090 = vmatprep.mubr.msk.f32.mxu0 %vm1437_vm6, %v1436_v10  ;;  %v1033_v29 = vld [vmem:[%s1727_s8] ss:$0 sm:$0xff]  ;;  %p1311_p7 = scmp.ne.s32.totalorder %s856_s20, %s1310_s29  ;;  %p1318_p12 = scmp.lt.s32.totalorder %s1310_s29, %s1310_s29 }
 0x12f   : > { %1070 = vmatpush3.msra.mxu1 %v648_v12  ;;  %1079 = vmatpush3.msra.mxu0 %v730_v16  ;;  %v569_v24 = vld [vmem:[#allocation2] sm:$0xff] }
 0x130   : > { %1071 = vmatprep.subr.mxu1 %v1436_v10  ;;  %1080 = vmatprep.subr.mxu0 %v1436_v10  ;;  %p1312_p10 = pnand %p1311_p7, %p1752_p2  ;;  %p1319_p1 = por %p1318_p12, %p1317_p9 }
 0x131   : > { %1072 = vmatpush3.msra.mxu1 %v647_v13  ;;  %1081 = vmatpush3.msra.mxu0 %v729_v17 }
 0x132   : > { %1073 = vmatprep.subr.mxu1 %v1436_v10  ;;  %1082 = vmatprep.subr.mxu0 %v1436_v10  ;;  %p1313_p11 = pneg %p1312_p10 }
 0x133   : > { %1074 = vmatpush3.msra.mxu1 %v646_v14  ;;  %1083 = vmatpush3.msra.mxu0 %v728_v18 }
 0x134   : > { %1076 = vmatmul.mubr.msk.f32.vlgmr.msra.gmra.mxu1 %vm650_vm7, %v567_v15  ;;  %1084 = vmatprep.subr.mxu0 %v1436_v10  ;;  %p1320_p3 = pnand %p1319_p1, %p1313_p11 }
 0x135   : > { %1085 = vmatpush3.msra.mxu0 %v727_v19 }
 0x136   : > { %1086 = vmatprep.subr.mxu0 %v1436_v10 }
 0x137   : > { %1087 = vmatpush3.msra.mxu0 %v726_v20 }
 0x138   : > { %1088 = vmatprep.subr.mxu0 %v1436_v10 }
 0x139   : > { %1089 = vmatpush3.msra.mxu0 %v725_v21 }
 0x1ec   : > { %v641_v22 = vpop.f32.mrf.mxu1 }
 0x1ed   : > { %v645_v25 = vadd.f32 %v641_v22, %v569_v24 }
 0x1ee   : > { %v1066_v23 = vpop.f32.mrf.mxu1 }
 0x1f4   : > { %v720_v26 = vpop.f32.mrf.mxu1 }
 0x1f5   : > { %v724_v27 = vadd.f32 %v720_v26, %v645_v25 }
 0x1f6   : > { %v1077_v28 = vpop.f32.mrf.mxu1 }
 0x1f7   : > { %826 = vst.msk [vmem:[#allocation12] sm:$0xff] %vm650_vm7, %v724_v27  ;;  %1091 = vmatmul.mubr.msk.f32.vlgmr.msra.gmra.mxu0 %vm738_vm8, %v724_v27 }
 0x2b7   : > { %v808_v30 = vpop.f32.mrf.mxu0 }
 0x2b8   : > { %v809_v31 = vadd.f32 %v1033_v29, %v808_v30 }
 0x2b9   : > { %v1092_v32 = vpop.f32.mrf.mxu0 }
 0x2ba   : > { %v813_v33 = vsel %vm812_vm9, %v809_v31, -inf }
 0x2bb   : > { %814 = vmax.xlane.f32.xlu0 %v813_v33 }
 0x344   : > { %v815_v34 = vpop.xlane.xlu0 %814 }
 0x345   : > { %v816_v35 = vsub.f32 %v809_v31, %v815_v34 }
 0x347   : > { %v817_v36 = vmul.f32 1.442695, %v816_v35 }
 0x349   : > { %1202 = vpow2.f32 %v817_v36 }
 0x356   : > { %v1203_v37 = vpop.eup %1202 }
 0x357   : > { %v819_v38 = vsel %vm812_vm9, %v1203_v37, 0.0 }
 0x358   : > { %820 = vadd.xlane.f32.xlu0 %v819_v38 }
 0x359   : > { %1323 = shalt.err (!%p1320_p3)
}
 0x35a   : > { %1111 = dma.vmem_to_hbm [thread:$0]  (%p1752_p2), %s856_s20, 128, %s1729_s10, [#allocation13]  }
 0x35b   : > { %s1036_s30 = sshll.u32 %s1418_s16, 7  ;;  %s842_s22 = sshll.u32 %s453_s21, 4  ;;  %s843_s22 = int_to_ptr.vmem [resolvable:$true] %s842_s22 }
 0x35c   : > { %s840_s12 = scalar_lea.hbm %s1728_s9, %s1036_s30  ;;  %s828_s11 = scalar_lea.sflag [#allocation5], %s451_s3 }
 0x35d   : > { %s1334_s29 = scalar_lea.vmem %s843_s22, 128  ;;  %p1753_p4 = scmp.ne.s32.totalorder %s1743_s24, 0 }
 0x35e   : > { %p1335_p5 = scmp.ne.s32.totalorder %s843_s22, %s1334_s29  ;;  %s1439_s16 = smov [#allocation11]  }
 0x35f   : > { %s1338_s20 = sshll.u32 %s1439_s16, 4  ;;  %s1339_s20 = int_to_ptr.vmem [resolvable:$false] %s1338_s20 }
 0x360   : > { %p1336_p8 = pnand %p1335_p5, %p1753_p4  ;;  %s1340_s19 = scalar_lea.vmem %s1339_s20, 256 }
 0x361   : > { %p1341_p13 = scmp.lt.s32.totalorder %s843_s22, %s1339_s20  ;;  %p1342_p0 = scmp.lt.s32.totalorder %s1340_s19, %s1334_s29 }
 0x362   : > { %p1337_p6 = pneg %p1336_p8 }
 0x363   : > { %p1343_p7 = por %p1342_p0, %p1341_p13 }
 0x365   : > { %p1344_p10 = pnand %p1343_p7, %p1337_p6 }
 0x3e1   : > { %v821_v39 = vpop.xlane.xlu0 %820 }
 0x3e2   : > { %1204 = vlog2.f32 %v821_v39 }
 0x3ef   : > { %v1205_v40 = vpop.eup %1204 }
 0x3f0   : > { %v823_v41 = vmul.f32 0.6931472, %v1205_v40 }
 0x3f2   : > { %v824_v42 = vsub.f32 %v816_v35, %v823_v41 }
 0x3f4   : > { %825 = vst.msk [vmem:[%s453_s21] sm:$0xff] %vm812_vm9, %v824_v42 }
 0x3f5   : > { %1347 = shalt.err (!%p1344_p10)
}
 0x3f6   : > { %s1348_s25 = scalar_lea.hbm %s840_s12, 128  ;;  %s1352_s21 = scalar_lea.hbm %s1728_s9, 1024 }
 0x3f7   : > { %p1349_p11 = scmp.ne.s32.totalorder %s840_s12, %s1348_s25  ;;  %p1353_p1 = scmp.lt.s32.totalorder %s840_s12, %s1728_s9 }
 0x3f8   : > { %p1354_p3 = scmp.lt.s32.totalorder %s1352_s21, %s1348_s25 }
 0x3f9   : > { %p1350_p9 = pnand %p1349_p11, %p1753_p4 }
 0x3fa   : > { %p1355_p5 = por %p1354_p3, %p1353_p1 }
 0x3fb   : > { %p1351_p12 = pneg %p1350_p9 }
 0x3fd   : > { %p1356_p8 = pnand %p1355_p5, %p1351_p12 }
 0x3ff   : > { %1359 = shalt.err (!%p1356_p8)
}
 0x400   : > { %1109 = dma.vmem_to_hbm [thread:$0]  (%p1753_p4), %s843_s22, 128, %s840_s12, %s828_s11  }
 0x401   : > { %1397 = dma.done.wait (%p1752_p2), [#allocation13], 128  }
 0x402   : > { %1399 = vsyncadd (%p1752_p2), [#allocation13], 4294967168 }
 0x403 PF: > { %p1142_p6 = scmp.ge.s32.totalorder %s1426_s18, 2  ;;  %s871_s28 = sand.u32 1, %s1406_s13  }
 0x404   : > { %p1754_p13 = scmp.ne.s32.totalorder %s1744_s26, 0  ;;  %s872_s29 = scalar_lea.sflag [#allocation5], %s871_s28 }
 0x406   : > { %p1129_p0 = pnand %p1142_p6, %p1754_p13 }
 0x408   : > { %p1130_p7 = pneg %p1129_p0 }
 0x40a   : > { %1401 = dma.done.wait (%p1130_p7), %s872_s29, 128  }
 0x40b   : > { %1403 = vsyncadd (%p1130_p7), %s872_s29, 4294967168  ;;  %s28_s18 = sadd.s32 1, %s1426_s18   ;;  %s1755_s16 = sld [smem:[#allocation19_spill]] }
 0x40c   : > { %p25_p4 = scmp.ge.s32.totalorder %s28_s18, 10   ;;  %s1756_s17 = sld [smem:[#allocation20_spill]] }
 0x40d   : > { %s1757_s13 = smov %s1410_s14  ;;  %s1758_s14 = smov %s1414_s15 }
 0x40e   : > { %s1759_s15 = smov %s1554_s27  ;;  %27 = sbr.rel (!%p25_p4) target bundleno = 11 (0xb), region = 127 }
 0x413   :  { %877 = vsyncpa [#allocation4], 1 }
 0x414   :  { %879 = vsyncpa [#allocation4 + $0x1], 1 }
 0x415   :  { %880 = vsyncpa [#allocation7], 1 }
 0x416   :  { %881 = vsyncpa [#allocation10], 1 }
 0x417   :  { %882 = vsyncpa [#allocation5], 1 }
 0x418   :  { %884 = vsyncpa [#allocation5 + $0x1], 1 }
 0x419   :  { %885 = vsyncpa [#allocation13], 1 }

</bundles_post_ra>
